<compile_context>
chip_gen: v5e
topology: v5e:2x2
jax: 0.10.0
libtpu: 0.0.40
codegen_flags: <defaults>
</compile_context>

<pallas_src>
import functools

import jax
import jax.numpy as jnp
from jax import lax
from jax.experimental import pallas as pl
from jax.experimental.pallas import tpu as pltpu

_VMEM_LIMIT = 32 * 1024 * 1024  # explicit scoped-VMEM limit (safe on v5e/v6e/v7x)


def _pass1_kernel(patch_ref, w_ref, b_ref, y_ref, sum_ref, ssq_ref, *, c_in, c_conv):
    """Per-tile conv (single MXU matmul) + maxpool + BatchNorm stats accumulation."""
    i = pl.program_id(0)

    @pl.when(i == 0)
    def _init():
        sum_ref[...] = jnp.zeros_like(sum_ref)
        ssq_ref[...] = jnp.zeros_like(ssq_ref)

    p = patch_ref[...]                                        # (9*Cin, tile_m)

    # Conv2d(3x3, s=2, p=1): one matmul with K = 9*Cin folded into the contraction.
    conv = jnp.dot(w_ref[...], p, preferred_element_type=jnp.float32)
    conv = conv + b_ref[...]                                  # (Cconv, tile_m) f32

    # MaxPool2d(2x2, s=2): pool taps == conv taps (1,1),(1,2),(2,1),(2,2) (no padding
    # contamination), so reuse the already-loaded patch rows.
    pool = jnp.maximum(
        jnp.maximum(p[4 * c_in:5 * c_in, :], p[5 * c_in:6 * c_in, :]),
        jnp.maximum(p[7 * c_in:8 * c_in, :], p[8 * c_in:9 * c_in, :]),
    ).astype(jnp.float32)                                     # (Cin, tile_m)

    # torch.cat along channels == write into disjoint channel rows (no concatenate).
    y_ref[0:c_conv, :] = conv.astype(y_ref.dtype)
    y_ref[c_conv:, :] = pool.astype(y_ref.dtype)

    # One-pass BN statistics (sum / sum-of-squares), accumulated across the M tiles.
    sum_ref[0:c_conv, :] = sum_ref[0:c_conv, :] + jnp.sum(conv, axis=1, keepdims=True)
    sum_ref[c_conv:, :] = sum_ref[c_conv:, :] + jnp.sum(pool, axis=1, keepdims=True)
    ssq_ref[0:c_conv, :] = ssq_ref[0:c_conv, :] + jnp.sum(conv * conv, axis=1, keepdims=True)
    ssq_ref[c_conv:, :] = ssq_ref[c_conv:, :] + jnp.sum(pool * pool, axis=1, keepdims=True)


def _pass2_kernel(y_ref, sum_ref, ssq_ref, gamma_ref, beta_ref, out_ref, *, inv_m, eps):
    """Per-tile BatchNorm normalize (folded into per-channel scale/shift) + ReLU."""
    mean = sum_ref[...] * inv_m                               # (Cout, 1)
    var = ssq_ref[...] * inv_m - mean * mean                  # biased (training-mode) var
    scale = gamma_ref[...] * lax.rsqrt(var + eps)
    shift = beta_ref[...] - mean * scale
    out_ref[...] = jnp.maximum(y_ref[...] * scale + shift, 0.0).astype(out_ref.dtype)


def _pick_tile_m(m, tile_m):
    """Largest multiple of 128 <= tile_m that divides M (fallback: one full block)."""
    if m % 128 != 0:
        return m
    tm = max(128, min(tile_m - tile_m % 128, m))
    while m % tm != 0:
        tm -= 128
    return tm


def downsampler_block(x_nchw, params, *, eps=1e-5, tile_m=1024):
    """EDANet DownsamplerBlock forward (ninput < noutput branch)."""
    w, b, gamma, beta = params["w"], params["b"], params["gamma"], params["beta"]
    c_conv, c_in = w.shape[0], w.shape[1]
    n, c, h, wdt = x_nchw.shape
    assert c == c_in and h % 2 == 0 and wdt % 2 == 0
    c_out = c_conv + c_in  # ninput < noutput -> concat conv output with maxpool
    ho, wo = h // 2, wdt // 2
    m = n * ho * wo
    tm = _pick_tile_m(m, tile_m)
    grid = (m // tm,)

    # --- layout glue (wrapper, plain JAX): channels-first, M on the fast axis ---
    # TODO(synk): fuse this window gather into the kernel with halo'd input DMA so
    # the raw input is only read once from HBM (removes the ~2.25x im2col blow-up).
    xp = jnp.pad(x_nchw, ((0, 0), (0, 0), (1, 1), (1, 1)))    # pad=1 for the 3x3 conv
    taps = []
    for ky in range(3):
        for kx in range(3):
            s = lax.slice(xp, (0, 0, ky, kx),
                          (n, c_in, ky + 2 * ho - 1, kx + 2 * wo - 1),
                          (1, 1, 2, 2))                        # (N, Cin, Ho, Wo)
            taps.append(jnp.transpose(s, (1, 0, 2, 3)).reshape(c_in, m))
    patches = jnp.concatenate(taps, axis=0)                    # (9*Cin, M)

    # PyTorch conv weight (Cconv, Cin, 3, 3) -> (Cconv, 9*Cin) matching patch rows.
    w2 = jnp.transpose(w, (0, 2, 3, 1)).reshape(c_conv, 9 * c_in)
    b2 = b.reshape(c_conv, 1).astype(jnp.float32)
    g2 = gamma.reshape(c_out, 1).astype(jnp.float32)
    be2 = beta.reshape(c_out, 1).astype(jnp.float32)

    # Pass 1: conv + pool + cross-tile BN stats.
    y_flat, ch_sum, ch_ssq = pl.pallas_call(
        functools.partial(_pass1_kernel, c_in=c_in, c_conv=c_conv),
        out_shape=(
            jax.ShapeDtypeStruct((c_out, m), jnp.float32),     # pre-BN activations
            jax.ShapeDtypeStruct((c_out, 1), jnp.float32),     # per-channel sum
            jax.ShapeDtypeStruct((c_out, 1), jnp.float32),     # per-channel sum of sq
        ),
        grid=grid,
        in_specs=[
            pl.BlockSpec((9 * c_in, tm), lambda i: (0, i)),
            pl.BlockSpec((c_conv, 9 * c_in), lambda i: (0, 0)),
            pl.BlockSpec((c_conv, 1), lambda i: (0, 0)),
        ],
        out_specs=(
            pl.BlockSpec((c_out, tm), lambda i: (0, i)),
            pl.BlockSpec((c_out, 1), lambda i: (0, 0)),
            pl.BlockSpec((c_out, 1), lambda i: (0, 0)),
        ),
        compiler_params=pltpu.CompilerParams(
            dimension_semantics=("arbitrary",),                # stats accumulate over tiles
            vmem_limit_bytes=_VMEM_LIMIT),
    )(patches, w2, b2)

    # Pass 2: normalize + affine + ReLU (independent tiles -> parallel / megacore).
    out_flat = pl.pallas_call(
        functools.partial(_pass2_kernel, inv_m=1.0 / m, eps=eps),
        out_shape=jax.ShapeDtypeStruct((c_out, m), x_nchw.dtype),
        grid=grid,
        in_specs=[
            pl.BlockSpec((c_out, tm), lambda i: (0, i)),
            pl.BlockSpec((c_out, 1), lambda i: (0, 0)),
            pl.BlockSpec((c_out, 1), lambda i: (0, 0)),
            pl.BlockSpec((c_out, 1), lambda i: (0, 0)),
            pl.BlockSpec((c_out, 1), lambda i: (0, 0)),
        ],
        out_specs=pl.BlockSpec((c_out, tm), lambda i: (0, i)),
        compiler_params=pltpu.CompilerParams(
            dimension_semantics=("parallel",),
            vmem_limit_bytes=_VMEM_LIMIT),
    )(y_flat, ch_sum, ch_ssq, g2, be2)

    out = out_flat.reshape(c_out, n, ho, wo)
    return jnp.transpose(out, (1, 0, 2, 3))                    # -> NCHW


def reference(x, params, eps=1e-5):
    """Pure-JAX reference of the same forward pass (for validation)."""
    w, b, gamma, beta = params["w"], params["b"], params["gamma"], params["beta"]
    conv = lax.conv_general_dilated(
        x, w, window_strides=(2, 2), padding=((1, 1), (1, 1)),
        dimension_numbers=("NCHW", "OIHW", "NCHW"))
    conv = conv + b.reshape(1, -1, 1, 1)
    pool = lax.reduce_window(x, -jnp.inf, lax.max, (1, 1, 2, 2), (1, 1, 2, 2), "VALID")
    y = jnp.concatenate([conv, pool], axis=1)
    mean = jnp.mean(y, axis=(0, 2, 3), keepdims=True)
    var = jnp.mean((y - mean) ** 2, axis=(0, 2, 3), keepdims=True)
    y = (y - mean) / jnp.sqrt(var + eps)
    y = y * gamma.reshape(1, -1, 1, 1) + beta.reshape(1, -1, 1, 1)
    return jnp.maximum(y, 0.0)


if __name__ == "__main__":
    ninput, noutput = 4, 8            # ninput < noutput branch (conv + maxpool concat)
    n, h, wdt = 2, 16, 16
    c_conv = noutput - ninput

    key = jax.random.PRNGKey(0)
    k_x, k_w, k_b, k_x2 = jax.random.split(key, 4)
    x = jax.random.normal(k_x, (n, ninput, h, wdt), jnp.float32)
    params = {
        "w": 0.1 * jax.random.normal(k_w, (c_conv, ninput, 3, 3), jnp.float32),
        "b": 0.1 * jax.random.normal(k_b, (c_conv,), jnp.float32),
        "gamma": jnp.ones((noutput,), jnp.float32),   # nn.BatchNorm2d default init
        "beta": jnp.zeros((noutput,), jnp.float32),
    }

    out = jax.block_until_ready(downsampler_block(x, params))
    ref = reference(x, params)
    assert out.shape == (n, noutput, h // 2, wdt // 2), out.shape
    assert jnp.allclose(out, ref, atol=1e-4, rtol=1e-4), "mismatch vs JAX reference"

    # Multi-tile path: M = 2*16*16 = 512 rows split into 4 tiles of 128 lanes ->
    # exercises the cross-tile BatchNorm stats accumulation and the pipelined grid.
    x2 = jax.random.normal(k_x2, (n, ninput, 32, 32), jnp.float32)
    out2 = jax.block_until_ready(downsampler_block(x2, params, tile_m=128))
    ref2 = reference(x2, params)
    assert out2.shape == (n, noutput, 16, 16), out2.shape
    assert jnp.allclose(out2, ref2, atol=1e-4, rtol=1e-4), "tiled mismatch vs JAX reference"

    print("KERNEL_OK")
</pallas_src>

<mosaic_0001>
module attributes {stable_mosaic.version = 11 : i64} {
  func.func @_pass1_kernel(%arg0: i32, %arg1: memref<36x128xf32, #tpu.memory_space<vmem>>, %arg2: memref<4x36xf32, #tpu.memory_space<vmem>>, %arg3: memref<4x1xf32, #tpu.memory_space<vmem>>, %arg4: memref<8x128xf32, #tpu.memory_space<vmem>>, %arg5: memref<8x1xf32, #tpu.memory_space<vmem>>, %arg6: memref<8x1xf32, #tpu.memory_space<vmem>>) attributes {dimension_semantics = [#tpu.dimension_semantics<arbitrary>], iteration_bounds = array<i64: 1>, scalar_prefetch = 0 : i64, scratch_operands = 0 : i64, tpu.core_type = #tpu.core_type<tc>, window_params = [{transform_indices = @transform_0, window_bounds = array<i64: 36, 128>}, {pipeline_mode = #tpu.pipeline_mode<synchronous>, transform_indices = @transform_1, window_bounds = array<i64: 4, 36>}, {pipeline_mode = #tpu.pipeline_mode<synchronous>, transform_indices = @transform_2, window_bounds = array<i64: 4, 1>}, {transform_indices = @transform_3, window_bounds = array<i64: 8, 128>}, {pipeline_mode = #tpu.pipeline_mode<synchronous>, transform_indices = @transform_4, window_bounds = array<i64: 8, 1>}, {pipeline_mode = #tpu.pipeline_mode<synchronous>, transform_indices = @transform_5, window_bounds = array<i64: 8, 1>}]} {
    %c0_i32 = arith.constant 0 : i32
    %0 = arith.cmpi eq, %arg0, %c0_i32 : i32
    %1 = arith.extui %0 : i1 to i32
    %c0_i32_0 = arith.constant 0 : i32
    %2 = arith.cmpi ne, %1, %c0_i32_0 : i32
    scf.if %2 {
      %cst_29 = arith.constant 0.000000e+00 : f32
      %40 = vector.broadcast %cst_29 : f32 to vector<8x1xf32>
      %c0_30 = arith.constant 0 : index
      %c0_31 = arith.constant 0 : index
      %41 = vector.load %arg5[%c0_30, %c0_31] : memref<8x1xf32, #tpu.memory_space<vmem>>, vector<8x1xf32>
      tpu.vector_store %arg5[%c0_30, %c0_31], %40 {strides = array<i32>} : memref<8x1xf32, #tpu.memory_space<vmem>>, vector<8x1xf32>,
      %cst_32 = arith.constant 0.000000e+00 : f32
      %42 = vector.broadcast %cst_32 : f32 to vector<8x1xf32>
      %c0_33 = arith.constant 0 : index
      %c0_34 = arith.constant 0 : index
      %43 = vector.load %arg6[%c0_33, %c0_34] : memref<8x1xf32, #tpu.memory_space<vmem>>, vector<8x1xf32>
      tpu.vector_store %arg6[%c0_33, %c0_34], %42 {strides = array<i32>} : memref<8x1xf32, #tpu.memory_space<vmem>>, vector<8x1xf32>,
    } else {
    }
    %c0 = arith.constant 0 : index
    %c0_1 = arith.constant 0 : index
    %3 = vector.load %arg1[%c0, %c0_1] : memref<36x128xf32, #tpu.memory_space<vmem>>, vector<36x128xf32>
    %c0_2 = arith.constant 0 : index
    %c0_3 = arith.constant 0 : index
    %4 = vector.load %arg2[%c0_2, %c0_3] : memref<4x36xf32, #tpu.memory_space<vmem>>, vector<4x36xf32>
    %cst = arith.constant dense<0.000000e+00> : vector<4x128xf32>
    %5 = tpu.matmul %4, %3, %cst {dimension_numbers = #tpu.dot_dimension_numbers<[1], [0], [0], [1], [0, 0, 1, 1], [], []>} : vector<4x36xf32>, vector<36x128xf32>, vector<4x128xf32> -> vector<4x128xf32>
    %c0_4 = arith.constant 0 : index
    %c0_5 = arith.constant 0 : index
    %6 = vector.load %arg3[%c0_4, %c0_5] : memref<4x1xf32, #tpu.memory_space<vmem>>, vector<4x1xf32>
    %7 = vector.broadcast %6 : vector<4x1xf32> to vector<4x128xf32>
    %8 = arith.addf %5, %7 : vector<4x128xf32>
    %9 = vector.extract_strided_slice %3 {offsets = [16, 0], sizes = [4, 128], strides = [1, 1]} : vector<36x128xf32> to vector<4x128xf32>
    %10 = vector.extract_strided_slice %3 {offsets = [20, 0], sizes = [4, 128], strides = [1, 1]} : vector<36x128xf32> to vector<4x128xf32>
    %11 = arith.maximumf %9, %10 : vector<4x128xf32>
    %12 = vector.extract_strided_slice %3 {offsets = [28, 0], sizes = [4, 128], strides = [1, 1]} : vector<36x128xf32> to vector<4x128xf32>
    %13 = vector.extract_strided_slice %3 {offsets = [32, 0], sizes = [4, 128], strides = [1, 1]} : vector<36x128xf32> to vector<4x128xf32>
    %14 = arith.maximumf %12, %13 : vector<4x128xf32>
    %15 = arith.maximumf %11, %14 : vector<4x128xf32>
    %c0_6 = arith.constant 0 : index
    %c0_7 = arith.constant 0 : index
    %16 = vector.load %arg4[%c0_6, %c0_7] : memref<8x128xf32, #tpu.memory_space<vmem>>, vector<4x128xf32>
    tpu.vector_store %arg4[%c0_6, %c0_7], %8 {strides = array<i32>} : memref<8x128xf32, #tpu.memory_space<vmem>>, vector<4x128xf32>,
    %c4 = arith.constant 4 : index
    %c0_8 = arith.constant 0 : index
    %17 = vector.load %arg4[%c4, %c0_8] : memref<8x128xf32, #tpu.memory_space<vmem>>, vector<4x128xf32>
    tpu.vector_store %arg4[%c4, %c0_8], %15 {strides = array<i32>} : memref<8x128xf32, #tpu.memory_space<vmem>>, vector<4x128xf32>,
    %c0_9 = arith.constant 0 : index
    %c0_10 = arith.constant 0 : index
    %18 = vector.load %arg5[%c0_9, %c0_10] : memref<8x1xf32, #tpu.memory_space<vmem>>, vector<4x1xf32>
    %cst_11 = arith.constant dense<0.000000e+00> : vector<4xf32>
    %19 = vector.multi_reduction <add>, %8, %cst_11 [1] : vector<4x128xf32> to vector<4xf32>
    %20 = vector.shape_cast %19 : vector<4xf32> to vector<4x1xf32>
    %21 = arith.addf %18, %20 : vector<4x1xf32>
    %c0_12 = arith.constant 0 : index
    %c0_13 = arith.constant 0 : index
    %22 = vector.load %arg5[%c0_12, %c0_13] : memref<8x1xf32, #tpu.memory_space<vmem>>, vector<4x1xf32>
    tpu.vector_store %arg5[%c0_12, %c0_13], %21 {strides = array<i32>} : memref<8x1xf32, #tpu.memory_space<vmem>>, vector<4x1xf32>,
    %c4_14 = arith.constant 4 : index
    %c0_15 = arith.constant 0 : index
    %23 = vector.load %arg5[%c4_14, %c0_15] : memref<8x1xf32, #tpu.memory_space<vmem>>, vector<4x1xf32>
    %cst_16 = arith.constant dense<0.000000e+00> : vector<4xf32>
    %24 = vector.multi_reduction <add>, %15, %cst_16 [1] : vector<4x128xf32> to vector<4xf32>
    %25 = vector.shape_cast %24 : vector<4xf32> to vector<4x1xf32>
    %26 = arith.addf %23, %25 : vector<4x1xf32>
    %c4_17 = arith.constant 4 : index
    %c0_18 = arith.constant 0 : index
    %27 = vector.load %arg5[%c4_17, %c0_18] : memref<8x1xf32, #tpu.memory_space<vmem>>, vector<4x1xf32>
    tpu.vector_store %arg5[%c4_17, %c0_18], %26 {strides = array<i32>} : memref<8x1xf32, #tpu.memory_space<vmem>>, vector<4x1xf32>,
    %c0_19 = arith.constant 0 : index
    %c0_20 = arith.constant 0 : index
    %28 = vector.load %arg6[%c0_19, %c0_20] : memref<8x1xf32, #tpu.memory_space<vmem>>, vector<4x1xf32>
    %29 = arith.mulf %8, %8 : vector<4x128xf32>
    %cst_21 = arith.constant dense<0.000000e+00> : vector<4xf32>
    %30 = vector.multi_reduction <add>, %29, %cst_21 [1] : vector<4x128xf32> to vector<4xf32>
    %31 = vector.shape_cast %30 : vector<4xf32> to vector<4x1xf32>
    %32 = arith.addf %28, %31 : vector<4x1xf32>
    %c0_22 = arith.constant 0 : index
    %c0_23 = arith.constant 0 : index
    %33 = vector.load %arg6[%c0_22, %c0_23] : memref<8x1xf32, #tpu.memory_space<vmem>>, vector<4x1xf32>
    tpu.vector_store %arg6[%c0_22, %c0_23], %32 {strides = array<i32>} : memref<8x1xf32, #tpu.memory_space<vmem>>, vector<4x1xf32>,
    %c4_24 = arith.constant 4 : index
    %c0_25 = arith.constant 0 : index
    %34 = vector.load %arg6[%c4_24, %c0_25] : memref<8x1xf32, #tpu.memory_space<vmem>>, vector<4x1xf32>
    %35 = arith.mulf %15, %15 : vector<4x128xf32>
    %cst_26 = arith.constant dense<0.000000e+00> : vector<4xf32>
    %36 = vector.multi_reduction <add>, %35, %cst_26 [1] : vector<4x128xf32> to vector<4xf32>
    %37 = vector.shape_cast %36 : vector<4xf32> to vector<4x1xf32>
    %38 = arith.addf %34, %37 : vector<4x1xf32>
    %c4_27 = arith.constant 4 : index
    %c0_28 = arith.constant 0 : index
    %39 = vector.load %arg6[%c4_27, %c0_28] : memref<8x1xf32, #tpu.memory_space<vmem>>, vector<4x1xf32>
    tpu.vector_store %arg6[%c4_27, %c0_28], %38 {strides = array<i32>} : memref<8x1xf32, #tpu.memory_space<vmem>>, vector<4x1xf32>,
    return
  }
  func.func @transform_0(%arg0: i32) -> (i32, i32) {
    %c0_i32 = arith.constant 0 : i32
    %c0_i32_0 = arith.constant 0 : i32
    return %c0_i32, %arg0 : i32, i32
  }
  func.func @transform_1(%arg0: i32) -> (i32, i32) {
    %c0_i32 = arith.constant 0 : i32
    %c0_i32_0 = arith.constant 0 : i32
    %c0_i32_1 = arith.constant 0 : i32
    return %c0_i32, %c0_i32_0 : i32, i32
  }
  func.func @transform_2(%arg0: i32) -> (i32, i32) {
    %c0_i32 = arith.constant 0 : i32
    %c0_i32_0 = arith.constant 0 : i32
    %c0_i32_1 = arith.constant 0 : i32
    return %c0_i32, %c0_i32_0 : i32, i32
  }
  func.func @transform_3(%arg0: i32) -> (i32, i32) {
    %c0_i32 = arith.constant 0 : i32
    %c0_i32_0 = arith.constant 0 : i32
    return %c0_i32, %arg0 : i32, i32
  }
  func.func @transform_4(%arg0: i32) -> (i32, i32) {
    %c0_i32 = arith.constant 0 : i32
    %c0_i32_0 = arith.constant 0 : i32
    %c0_i32_1 = arith.constant 0 : i32
    return %c0_i32, %c0_i32_0 : i32, i32
  }
  func.func @transform_5(%arg0: i32) -> (i32, i32) {
    %c0_i32 = arith.constant 0 : i32
    %c0_i32_0 = arith.constant 0 : i32
    %c0_i32_1 = arith.constant 0 : i32
    return %c0_i32, %c0_i32_0 : i32, i32
  }
}

</mosaic_0001>

<bundles_post_ra>
// kernel: tpu_custom_call.1
= control target key start
LH: loop header
LB: loop body
LE: loop exit
PB: predicated region body
PF: predicated region fallthrough
CT: control target
= control target key end

     0   :  { %11 = vsyncpa [#allocation3], 0  ;;  %s294_s0 = inlined_call_operand.hbm [shape: f32[36,128], index: 0, kind: input, shape index: {}]   ;;  %s295_s1 = inlined_call_operand.vmem [shape: f32[4,36], index: 1, kind: input, shape index: {}]   ;;  %s296_s2 = inlined_call_operand.vmem [shape: f32[4,1], index: 2, kind: input, shape index: {}]   ;;  %s297_s3 = inlined_call_operand.hbm [shape: f32[8,128], index: 3, kind: output, shape index: {0}]   ;;  %s298_s4 = inlined_call_operand.vmem [shape: f32[8,1], index: 4, kind: output, shape index: {1}]   ;;  %s299_s5 = inlined_call_operand.vmem [shape: f32[8,1], index: 5, kind: output, shape index: {2}]  }
   0x1   :  { %12 = vsyncpa [#allocation4], 0  ;;  %s17_s20 = sshll.u32 %s294_s0, 4  ;;  %s207_s21 = smov [#allocation2]   ;;  %s18_s20 = int_to_ptr.hbm [resolvable:$true] %s17_s20 }
   0x2   :  { %s19_s22 = sshll.u32 %s207_s21, 4  ;;  %s208_s23 = smov 128   ;;  %s20_s22 = int_to_ptr.vmem [resolvable:$true] %s19_s22 }
   0x3   :  { %s209_s24 = smov 8  }
   0x4   :  { %25 = dma.hbm_to_vmem [thread:$0]  %s18_s20, 640, %s20_s22, [#allocation3], %s208_s23, %s208_s23, %s209_s24  }
   0x5   :  { %203 = dma.done.wait [#allocation3], 640  }
   0x6   :  { %204 = vsyncadd [#allocation3], 4294966656  ;;  %v210_v0 = vmov 0   ;;  %vm57_vm0 = vcmask 1043456   ;;  %v45_v1 = vld [vmem:[#allocation2 + $0x20] sm:$0xf] }
   0x7   :  { %154 = vset.pattern.permute.xlu0 %v210_v0  ;;  %v44_v2 = vld [vmem:[#allocation2 + $0x18] sm:$0xff]  ;;  %v43_v3 = vld [vmem:[#allocation2 + $0x10] sm:$0xff]  ;;  %146 = vmatpush.msk.msra.mxu0 %vm57_vm0, %v45_v1  ;;  %v85_v4 = vrot.slane %v45_v1, 4  ;;  %v47_v6 = vld [vmem:[%s296_s2] sm:$0xf]  ;;  %vm53_vm1 = vcmask 293888  }
   0x8   :  { %v82_v5 = vrot.slane %v43_v3, 4  ;;  %50 = vperm.xlu0 %154, %v47_v6   ;;  %v42_v9 = vld [vmem:[#allocation2 + $0x8] sm:$0xff]  ;;  %v41_v11 = vld [vmem:[#allocation2] sm:$0xff]  ;;  %vm38_vm2 = vcmask 7168   ;;  %v211_v17 = vmov 0.0   ;;  %vm99_vm3 = vcmask 3072  }
   0x9   :  { %73 = vmatpush.msra.mxu0 %v44_v2  ;;  %v87_v7 = vmax.f32 %v44_v2, %v85_v4  ;;  %v46_v12 = vld [vmem:[%s295_s1] sm:$0xf]  ;;  %39 = vst.msk [vmem:[%s298_s4] sm:$0xff] %vm38_vm2, %v211_v17  ;;  %s212_s9 = smov [#allocation5]   ;;  %s128_s13 = sshll.u32 %s297_s3, 4  ;;  %s129_s13 = int_to_ptr.hbm [resolvable:$true] %s128_s13 }
   0xa   :  { %v84_v8 = vmax.f32 %v43_v3, %v82_v5  ;;  %40 = vst.msk [vmem:[%s299_s5] sm:$0xff] %vm38_vm2, %v211_v17  ;;  %s126_s10 = sshll.u32 %s212_s9, 4  ;;  %s127_s10 = int_to_ptr.vmem [resolvable:$true] %s126_s10 }
   0xb   :  { %v89_v10 = vrot.slane %v87_v7, 4  ;;  %74 = vmatpush.msra.mxu0 %v43_v3 }
   0xd   :  { %75 = vmatpush.msra.mxu0 %v42_v9  ;;  %v91_v13 = vmax.f32 %v84_v8, %v89_v10 }
   0xf   :  { %76 = vmatpush.msra.mxu0 %v41_v11  ;;  %v102_v14 = vsel %vm57_vm0, %v91_v13, 0.0  ;;  %93 = vst [vmem:[#allocation5 + $0x4] sm:$0xf] %v91_v13  ;;  %v115_v15 = vmul.f32 %v91_v13, %v91_v13 }
  0x10   :  { %147 = vmatmul.msk.f32.vlgmr.msra.gmra.mxu0 %vm53_vm1, %v46_v12  ;;  %103 = vadd.xlane.f32.xlu1 %v102_v14  ;;  %v101_v18 = vld [vmem:[%s298_s4 + $0x4] sm:$0xf]  ;;  %v94_v30 = vld [vmem:[%s298_s4] sm:$0xf] }
  0x11   :  { %v116_v16 = vsel %vm57_vm0, %v115_v15, 0.0  ;;  %v114_v28 = vld [vmem:[%s299_s5 + $0x4] sm:$0xf]  ;;  %v107_v32 = vld [vmem:[%s299_s5] sm:$0xf] }
  0x12   :  { %117 = vadd.xlane.f32.xlu2 %v116_v16 }
  0x7a   :  { %v51_v21 = vpop.permute.xlu0 %50 }
  0x83   :  { %v104_v19 = vpop.xlane.xlu1 %103 }
  0x84   :  { %v105_v20 = vadd.f32 %v104_v19, %v101_v18 }
  0x85   :  { %v118_v27 = vpop.xlane.xlu2 %117 }
  0x86   :  { %106 = vst.msk [vmem:[%s298_s4 + $0x4] sm:$0xf] %vm99_vm3, %v105_v20  ;;  %v119_v29 = vadd.f32 %v118_v27, %v114_v28 }
  0x88   :  { %120 = vst.msk [vmem:[%s299_s5 + $0x4] sm:$0xf] %vm99_vm3, %v119_v29 }
  0x8d   :  { %v78_v22 = vpop.f32.mrf.mxu0 }
  0x8e   :  { %v79_v23 = vadd.f32 %v78_v22, %v51_v21 }
  0x90   :  { %92 = vst [vmem:[#allocation5] sm:$0xf] %v79_v23  ;;  %v95_v24 = vsel %vm57_vm0, %v79_v23, 0.0  ;;  %v108_v25 = vmul.f32 %v79_v23, %v79_v23 }
  0x91   :  { %96 = vadd.xlane.f32.xlu0 %v95_v24  ;;  %131 = dma.vmem_to_hbm [thread:$0]  %s127_s10, 128, %s129_s13, [#allocation4]  }
  0x92   :  { %v109_v26 = vsel %vm57_vm0, %v108_v25, 0.0 }
  0x93   :  { %110 = vadd.xlane.f32.xlu1 %v109_v26 }
 0x104   :  { %v97_v31 = vpop.xlane.xlu0 %96 }
 0x105   :  { %v98_v33 = vadd.f32 %v97_v31, %v94_v30 }
 0x106   :  { %v111_v34 = vpop.xlane.xlu1 %110 }
 0x107   :  { %100 = vst.msk [vmem:[%s298_s4] sm:$0xf] %vm99_vm3, %v98_v33  ;;  %v112_v35 = vadd.f32 %v111_v34, %v107_v32 }
 0x109   :  { %113 = vst.msk [vmem:[%s299_s5] sm:$0xf] %vm99_vm3, %v112_v35 }
 0x10a   :  { %205 = dma.done.wait [#allocation4], 128  }
 0x10b   :  { %206 = vsyncadd [#allocation4], 4294967168 }
 0x10c   :  { %144 = vsyncpa [#allocation3], 1 }
 0x10d   :  { %145 = vsyncpa [#allocation4], 1 }

</bundles_post_ra>
